<compile_context>
chip_gen: v6e
topology: v6e:2x2x1
jax: 0.10.0
libtpu: 0.0.40
codegen_flags: <defaults>
</compile_context>

<pallas_src>
import math
import functools

import numpy as np
import jax
import jax.numpy as jnp
from jax.experimental import pallas as pl
from jax.experimental.pallas import tpu as pltpu


# ------------------------------ helpers ------------------------------------ #

def _pick_tile(dim, candidates):
    """Largest preferred tile that divides `dim`; fall back to the full dim."""
    for c in candidates:
        if dim >= c and dim % c == 0:
            return c
    return dim


# --------------------------- tiled matmul kernel ---------------------------- #

def _matmul_kernel(x_ref, w_ref, o_ref, acc_ref):
    @pl.when(pl.program_id(2) == 0)
    def _():
        acc_ref[...] = jnp.zeros_like(acc_ref)

    acc_ref[...] += jnp.dot(x_ref[...], w_ref[...],
                            preferred_element_type=jnp.float32)

    @pl.when(pl.program_id(2) == pl.num_programs(2) - 1)
    def _():
        o_ref[...] = acc_ref[...].astype(o_ref.dtype)


def pallas_matmul(x, w):
    """x: (M, K) @ w: (K, N) -> (M, N) with K-reduction pipelined over tiles."""
    M, K = x.shape
    K2, N = w.shape
    assert K == K2
    # Larger tm amortizes weight re-streaming; footprint stays well under 32 MiB.
    tm = _pick_tile(M, (512, 256, 128))
    tn = _pick_tile(N, (256, 128))
    tk = _pick_tile(K, (1024, 512, 256, 128))
    grid = (M // tm, N // tn, K // tk)
    return pl.pallas_call(
        _matmul_kernel,
        out_shape=jax.ShapeDtypeStruct((M, N), x.dtype),
        grid=grid,
        in_specs=[
            pl.BlockSpec((tm, tk), lambda i, j, k: (i, k)),
            pl.BlockSpec((tk, tn), lambda i, j, k: (k, j)),
        ],
        out_specs=pl.BlockSpec((tm, tn), lambda i, j, k: (i, j)),
        scratch_shapes=[pltpu.VMEM((tm, tn), jnp.float32)],
        compiler_params=pltpu.CompilerParams(
            dimension_semantics=("parallel", "parallel", "arbitrary"),
            vmem_limit_bytes=32 * 1024 * 1024),
    )(x, w)


# ------------------------------ RoPE kernel --------------------------------- #
# One elementwise pass that applies rotary embedding to Q and K exactly once
# (hoisted out of the attention kernel) and folds the 1/sqrt(D) scale into Q.

def _rope_kernel(q_ref, k_ref, cos_ref, sin_ref, qo_ref, ko_ref, *, scale):
    D = q_ref.shape[-1]
    half = D // 2
    cos = cos_ref[0].astype(jnp.float32)[:, None, :]   # (ts, 1, D)
    sin = sin_ref[0].astype(jnp.float32)[:, None, :]

    def rope(x):                                       # x: (ts, N, D) fp32
        x1 = x[..., :half]
        x2 = x[..., half:]
        # TODO(synk): pltpu.roll(x, half, -1) * sign would use the XLU instead, but
        # lane-concat is kept for robustness at non-128-multiple head_dim.
        return x * cos + jnp.concatenate((-x2, x1), axis=-1) * sin

    qo_ref[0] = (rope(q_ref[0].astype(jnp.float32)) * scale).astype(qo_ref.dtype)
    ko_ref[0] = rope(k_ref[0].astype(jnp.float32)).astype(ko_ref.dtype)


def pallas_rope(q, k, cos, sin, *, q_scale):
    """q: (B, S, NH, D), k: (B, S, NKV, D), cos/sin: (B, S, D) fp32."""
    B, S, NH, D = q.shape
    NKV = k.shape[2]
    ts = _pick_tile(S, (512, 256, 128))
    grid = (B, S // ts)
    kernel = functools.partial(_rope_kernel, scale=q_scale)
    return pl.pallas_call(
        kernel,
        out_shape=(jax.ShapeDtypeStruct(q.shape, q.dtype),
                   jax.ShapeDtypeStruct(k.shape, k.dtype)),
        grid=grid,
        in_specs=[
            pl.BlockSpec((1, ts, NH, D), lambda b, s: (b, s, 0, 0)),
            pl.BlockSpec((1, ts, NKV, D), lambda b, s: (b, s, 0, 0)),
            pl.BlockSpec((1, ts, D), lambda b, s: (b, s, 0)),
            pl.BlockSpec((1, ts, D), lambda b, s: (b, s, 0)),
        ],
        out_specs=(pl.BlockSpec((1, ts, NH, D), lambda b, s: (b, s, 0, 0)),
                   pl.BlockSpec((1, ts, NKV, D), lambda b, s: (b, s, 0, 0))),
        compiler_params=pltpu.CompilerParams(
            dimension_semantics=("parallel", "parallel"),
            vmem_limit_bytes=32 * 1024 * 1024),
    )(q, k, cos, sin)


# ------------------------ flash attention kernel ---------------------------- #

def _flash_attn_kernel(q_ref, k_ref, v_ref, bias_ref, o_ref,
                       qs_ref, m_ref, l_ref, acc_ref, *,
                       n_kv, n_rep, head_dim):
    # q block:   (1, tq,  NH*D)   -- natural layout, no HBM transpose
    # k/v block: (1, tkv, NKV*D)
    # bias:      (1, 1,   tkv)    -- per-key additive padding bias
    # out:       (1, tq,  NH*D)   -- one lane-dense store per query tile
    i = pl.program_id(1)          # query-tile index
    j = pl.program_id(2)          # kv-tile index (reduction axis, last in grid)
    tq = q_ref.shape[1]
    tkv = k_ref.shape[1]
    D = head_dim
    R = tq * n_rep                # fused rows per KV group (head-major ordering)
    cdt = k_ref.dtype             # MXU operand dtype (bf16 stays bf16)

    # ---- per-query-tile init + one-time staging of fused per-group queries ----
    @pl.when(j == 0)
    def _():
        m_ref[...] = jnp.full_like(m_ref, -jnp.inf)
        l_ref[...] = jnp.zeros_like(l_ref)
        acc_ref[...] = jnp.zeros_like(acc_ref)
        q_all = q_ref[0]                                   # (tq, NH*D), RoPE'd + scaled
        for g in range(n_kv):
            for h in range(n_rep):
                col0 = (g * n_rep + h) * D
                qs_ref[g, h * tq:(h + 1) * tq, :] = q_all[:, col0:col0 + D]

    def _softmax_update(g, scores, v_g):
        m_prev = m_ref[g]                                  # (R, 1)
        m_new = jnp.maximum(m_prev, jnp.max(scores, axis=-1, keepdims=True))
        alpha = jnp.exp(m_prev - m_new)
        p = jnp.exp(scores - m_new)
        l_ref[g] = alpha * l_ref[g] + jnp.sum(p, axis=-1, keepdims=True)
        acc_ref[g] = alpha * acc_ref[g] + jax.lax.dot_general(
            p.astype(cdt), v_g, (((1,), (0,)), ((), ())),
            preferred_element_type=jnp.float32)
        m_ref[g] = m_new

    def _process(extra_bias):
        bias = bias_ref[0].astype(jnp.float32)             # (1, tkv)
        for g in range(n_kv):
            k_g = k_ref[0, :, g * D:(g + 1) * D]           # (tkv, D)
            v_g = v_ref[0, :, g * D:(g + 1) * D]           # (tkv, D)
            # one fused MXU call for all n_rep query heads of this KV group
            s = jax.lax.dot_general(qs_ref[g], k_g, (((1,), (1,)), ((), ())),
                                    preferred_element_type=jnp.float32)   # (R, tkv)
            s = s + bias
            if extra_bias is not None:
                s = s + extra_bias
            _softmax_update(g, s, v_g)

    # Diagonal tile: build + apply the in-kernel causal mask (tq == tkv).
    @pl.when(j == i)
    def _():
        row = jax.lax.broadcasted_iota(jnp.int32, (tq, tkv), 0)
        col = jax.lax.broadcasted_iota(jnp.int32, (tq, tkv), 1)
        neg = jnp.where(row >= col, 0.0, -1e30).astype(jnp.float32)
        if n_rep > 1:
            neg = jnp.concatenate([neg] * n_rep, axis=0)   # (R, tkv), rows (head, t)
        _process(neg)

    # Interior live tile: every key is causally allowed, skip all mask work.
    @pl.when(j < i)
    def _():
        _process(None)

    # ---- finalize: normalize and emit one lane-dense (tq, NH*D) store ----
    @pl.when(j == pl.num_programs(2) - 1)
    def _():
        outs = []
        for g in range(n_kv):
            l_g = l_ref[g]
            l_g = jnp.where(l_g == 0.0, jnp.float32(1.0), l_g)   # guard masked rows
            inv = pl.reciprocal(l_g, approx=True)
            inv = inv * (2.0 - l_g * inv)                        # one Newton step
            acc_g = acc_ref[g] * inv                             # (R, D)
            for h in range(n_rep):                               # un-fuse heads
                outs.append(acc_g[h * tq:(h + 1) * tq, :])
        o_ref[0] = jnp.concatenate(outs, axis=-1).astype(o_ref.dtype)


def _flash_seq_tile(S, QW, KW, n_kv, n_rep, D, itemsize,
                    budget=24 * 1024 * 1024):
    """Largest seq tile whose rough VMEM footprint fits the scoped budget."""
    lane_d = -(-D // 128) * 128
    for t in (256, 128):
        if S % t:
            continue
        R = t * n_rep
        est = (2 * t * (QW + 2 * KW) * itemsize        # double-buffered q/k/v blocks
               + 2 * t * QW * itemsize                  # double-buffered output block
               + n_kv * R * lane_d * (4 + itemsize)     # acc (f32) + staged q scratch
               + 2 * n_kv * R * 128 * 4)                # m / l scratch (lane-padded)
        if est <= budget:
            return t
    # TODO(synk): S not a multiple of 128 falls back to one full-length tile; pad S
    # (masking padded keys via kv_bias) to avoid this on long ragged sequences.
    return _pick_tile(S, (128,))


def pallas_flash_attention(q, k, v, kv_bias, *, num_kv_heads, head_dim):
    """q: (B, S, NH*D); k/v: (B, S, NKV*D); kv_bias: (B, 1, S) fp32 additive
    per-key bias.  Returns (B, S, NH*D).  Causal mask is generated in-kernel."""
    B, S, QW = q.shape
    KW = k.shape[-1]
    D = head_dim
    n_kv = num_kv_heads
    n_rep = QW // KW
    assert KW == n_kv * D and QW == n_kv * n_rep * D

    itemsize = jnp.dtype(q.dtype).itemsize
    tq = _flash_seq_tile(S, QW, KW, n_kv, n_rep, D, itemsize)
    tkv = tq                       # tq == tkv required by the causal-skip logic
    nq, nk = S // tq, S // tkv
    R = tq * n_rep

    kernel = functools.partial(_flash_attn_kernel, n_kv=n_kv, n_rep=n_rep,
                               head_dim=D)

    # Clamp the kv block index to the causal frontier: dead steps re-use the
    # previous window (Pallas dedups identical consecutive indices -> no DMA).
    kv_idx = lambda b, i, j: (b, jnp.minimum(j, i), 0)
    bias_idx = lambda b, i, j: (b, 0, jnp.minimum(j, i))

    return pl.pallas_call(
        kernel,
        out_shape=jax.ShapeDtypeStruct((B, S, QW), q.dtype),
        grid=(B, nq, nk),
        in_specs=[
            pl.BlockSpec((1, tq, QW), lambda b, i, j: (b, i, 0)),   # q (resident over j)
            pl.BlockSpec((1, tkv, KW), kv_idx),                     # k
            pl.BlockSpec((1, tkv, KW), kv_idx),                     # v
            pl.BlockSpec((1, 1, tkv), bias_idx),                    # key padding bias
        ],
        out_specs=pl.BlockSpec((1, tq, QW), lambda b, i, j: (b, i, 0)),
        scratch_shapes=[
            pltpu.VMEM((n_kv, R, D), q.dtype),       # staged fused per-group queries
            pltpu.VMEM((n_kv, R, 1), jnp.float32),   # running max
            pltpu.VMEM((n_kv, R, 1), jnp.float32),   # running denom
            pltpu.VMEM((n_kv, R, D), jnp.float32),   # output accumulator
        ],
        compiler_params=pltpu.CompilerParams(
            dimension_semantics=("parallel", "parallel", "arbitrary"),
            vmem_limit_bytes=32 * 1024 * 1024),
    )(q, k, v, kv_bias)


# ------------------------------ module wrapper ------------------------------ #

def rope_cos_sin(position_ids, head_dim, base):
    """Phi3RotaryEmbedding (rope_scaling=None path). Returns (B, S, D) fp32 cos/sin."""
    inv_freq = 1.0 / (base ** (jnp.arange(0, head_dim, 2, dtype=jnp.float32) / head_dim))
    freqs = position_ids.astype(jnp.float32)[:, :, None] * inv_freq[None, None, :]
    emb = jnp.concatenate((freqs, freqs), axis=-1)
    return jnp.cos(emb), jnp.sin(emb)


class Phi3FastAttentionPallas:
    def __init__(self, hidden_size, num_heads, num_kv_heads, rope_theta=10000.0,
                 key=None, dtype=jnp.float32):
        # Note: pass dtype=jnp.bfloat16 to run all MXU operands in bf16 with fp32
        # accumulation (recommended on v6e/v7x); the demo below uses fp32 so the
        # reference comparison is exact enough.
        assert hidden_size % num_heads == 0
        self.hidden_size = hidden_size
        self.num_heads = num_heads
        self.num_kv_heads = num_kv_heads
        self.head_dim = hidden_size // num_heads
        self.n_rep = num_heads // num_kv_heads
        self.rope_theta = rope_theta

        op_size = num_heads * self.head_dim + 2 * (num_kv_heads * self.head_dim)
        k1, k2 = jax.random.split(key, 2)
        # stored as (in, out) so that y = x @ W
        self.w_qkv = jax.random.normal(k1, (hidden_size, op_size), dtype) * 0.05
        self.w_o = jax.random.normal(k2, (num_heads * self.head_dim, hidden_size), dtype) * 0.05

    def __call__(self, hidden_states, attention_mask, position_ids):
        B, S, H = hidden_states.shape
        NH, NKV, D = self.num_heads, self.num_kv_heads, self.head_dim
        q_cols = NH * D

        # qkv projection (tiled Pallas matmul)
        qkv = pallas_matmul(hidden_states.reshape(B * S, H), self.w_qkv)
        qkv = qkv.reshape(B, S, -1)

        # Free reshapes only -- no HBM transposes anywhere on this path.
        q = qkv[..., :q_cols].reshape(B, S, NH, D)
        k = qkv[..., q_cols:q_cols + NKV * D].reshape(B, S, NKV, D)
        v = qkv[..., q_cols + NKV * D:]                      # (B, S, NKV*D) flat

        cos, sin = rope_cos_sin(position_ids, D, self.rope_theta)

        # RoPE hoisted out of attention; 1/sqrt(D) folded into Q here.
        q, k = pallas_rope(q, k, cos, sin, q_scale=1.0 / math.sqrt(D))
        q = q.reshape(B, S, NH * D)
        k = k.reshape(B, S, NKV * D)

        # Causal mask is generated inside the kernel; only the key-padding part of
        # the additive mask is carried in (last query row of a causal mask).
        if attention_mask is not None:
            # TODO(synk): only 'causal + key padding' additive masks are supported.
            kv_bias = attention_mask[:, 0, -1, :].reshape(B, 1, S).astype(jnp.float32)
        else:
            kv_bias = jnp.zeros((B, 1, S), jnp.float32)

        attn = pallas_flash_attention(q, k, v, kv_bias,
                                      num_kv_heads=NKV, head_dim=D)   # (B, S, NH*D)

        # output projection (tiled Pallas matmul)
        out = pallas_matmul(attn.reshape(B * S, NH * D), self.w_o)
        return out.reshape(B, S, self.hidden_size)


# ------------------------------ pure-JAX reference -------------------------- #

def reference_forward(mod, hidden_states, attention_mask, position_ids):
    B, S, H = hidden_states.shape
    NH, NKV, D = mod.num_heads, mod.num_kv_heads, mod.head_dim
    q_pos = NH * D
    qkv = hidden_states.reshape(B * S, H) @ mod.w_qkv
    qkv = qkv.reshape(B, S, -1)
    q = qkv[..., :q_pos].reshape(B, S, NH, D).transpose(0, 2, 1, 3)
    k = qkv[..., q_pos:q_pos + NKV * D].reshape(B, S, NKV, D).transpose(0, 2, 1, 3)
    v = qkv[..., q_pos + NKV * D:].reshape(B, S, NKV, D).transpose(0, 2, 1, 3)
    cos, sin = rope_cos_sin(position_ids, D, mod.rope_theta)
    cos_ = cos[:, None]; sin_ = sin[:, None]

    def rot(x):
        x1 = x[..., :D // 2]; x2 = x[..., D // 2:]
        return jnp.concatenate((-x2, x1), axis=-1)

    q = q * cos_ + rot(q) * sin_
    k = k * cos_ + rot(k) * sin_
    k = jnp.repeat(k, mod.n_rep, axis=1)
    v = jnp.repeat(v, mod.n_rep, axis=1)
    scores = jnp.einsum("bhqd,bhkd->bhqk", q, k) / math.sqrt(D)
    scores = scores + attention_mask
    w = jax.nn.softmax(scores.astype(jnp.float32), axis=-1)
    attn = jnp.einsum("bhqk,bhkd->bhqd", w, v)
    attn = attn.transpose(0, 2, 1, 3).reshape(B * S, NH * D)
    return (attn @ mod.w_o).reshape(B, S, H)


# ----------------------------------- main ----------------------------------- #

if __name__ == "__main__":
    B, S, H = 2, 8, 32
    NH, NKV = 4, 2          # head_dim = 8, GQA with n_rep = 2

    key = jax.random.PRNGKey(0)
    k_w, k_x = jax.random.split(key)

    mod = Phi3FastAttentionPallas(H, NH, NKV, rope_theta=10000.0, key=k_w)

    hidden_states = jax.random.normal(k_x, (B, S, H), jnp.float32)
    position_ids = jnp.broadcast_to(jnp.arange(S, dtype=jnp.int32)[None, :], (B, S))

    # additive causal mask (B, 1, S, S): 0 where allowed, large negative otherwise
    causal = jnp.tril(jnp.ones((S, S), dtype=bool))
    attention_mask = jnp.where(causal, 0.0, -1e9).astype(jnp.float32)
    attention_mask = jnp.broadcast_to(attention_mask[None, None], (B, 1, S, S))

    out = mod(hidden_states, attention_mask, position_ids)
    out = jax.block_until_ready(out)

    ref = reference_forward(mod, hidden_states, attention_mask, position_ids)
    # margin covers online-softmax accumulation order + approx reciprocal (+ Newton step)
    np.testing.assert_allclose(np.asarray(out), np.asarray(ref), rtol=1e-3, atol=1e-3)

    print("KERNEL_OK")
</pallas_src>

<mosaic_0001>
module attributes {stable_mosaic.version = 11 : i64} {
  func.func @_matmul_kernel(%arg0: i32, %arg1: i32, %arg2: i32, %arg3: memref<16x32xf32, #tpu.memory_space<vmem>>, %arg4: memref<32x64xf32, #tpu.memory_space<vmem>>, %arg5: memref<16x64xf32, #tpu.memory_space<vmem>>, %arg6: memref<16x64xf32, #tpu.memory_space<vmem>>) attributes {dimension_semantics = [#tpu.dimension_semantics<parallel>, #tpu.dimension_semantics<parallel>, #tpu.dimension_semantics<arbitrary>], iteration_bounds = array<i64: 1, 1, 1>, scalar_prefetch = 0 : i64, scratch_operands = 1 : i64, tpu.core_type = #tpu.core_type<tc>, window_params = [{transform_indices = @transform_0, window_bounds = array<i64: 16, 32>}, {transform_indices = @transform_1, window_bounds = array<i64: 32, 64>}, {transform_indices = @transform_2, window_bounds = array<i64: 16, 64>}]} {
    %c0_i32 = arith.constant 0 : i32
    %0 = arith.cmpi eq, %arg2, %c0_i32 : i32
    %1 = arith.extui %0 : i1 to i32
    %c0_i32_0 = arith.constant 0 : i32
    %2 = arith.cmpi ne, %1, %c0_i32_0 : i32
    scf.if %2 {
      %cst_10 = arith.constant 0.000000e+00 : f32
      %12 = vector.broadcast %cst_10 : f32 to vector<16x64xf32>
      %c0_11 = arith.constant 0 : index
      %c0_12 = arith.constant 0 : index
      %13 = vector.load %arg6[%c0_11, %c0_12] : memref<16x64xf32, #tpu.memory_space<vmem>>, vector<16x64xf32>
      tpu.vector_store %arg6[%c0_11, %c0_12], %12 {strides = array<i32>} : memref<16x64xf32, #tpu.memory_space<vmem>>, vector<16x64xf32>,
    } else {
    }
    %c0 = arith.constant 0 : index
    %c0_1 = arith.constant 0 : index
    %3 = vector.load %arg6[%c0, %c0_1] : memref<16x64xf32, #tpu.memory_space<vmem>>, vector<16x64xf32>
    %c0_2 = arith.constant 0 : index
    %c0_3 = arith.constant 0 : index
    %4 = vector.load %arg3[%c0_2, %c0_3] : memref<16x32xf32, #tpu.memory_space<vmem>>, vector<16x32xf32>
    %c0_4 = arith.constant 0 : index
    %c0_5 = arith.constant 0 : index
    %5 = vector.load %arg4[%c0_4, %c0_5] : memref<32x64xf32, #tpu.memory_space<vmem>>, vector<32x64xf32>
    %cst = arith.constant dense<0.000000e+00> : vector<16x64xf32>
    %6 = tpu.matmul %4, %5, %cst {dimension_numbers = #tpu.dot_dimension_numbers<[1], [0], [0], [1], [0, 0, 1, 1], [], []>} : vector<16x32xf32>, vector<32x64xf32>, vector<16x64xf32> -> vector<16x64xf32>
    %7 = arith.addf %3, %6 : vector<16x64xf32>
    %c0_6 = arith.constant 0 : index
    %c0_7 = arith.constant 0 : index
    %8 = vector.load %arg6[%c0_6, %c0_7] : memref<16x64xf32, #tpu.memory_space<vmem>>, vector<16x64xf32>
    tpu.vector_store %arg6[%c0_6, %c0_7], %7 {strides = array<i32>} : memref<16x64xf32, #tpu.memory_space<vmem>>, vector<16x64xf32>,
    %c0_i32_8 = arith.constant 0 : i32
    %9 = arith.cmpi eq, %arg2, %c0_i32_8 : i32
    %10 = arith.extui %9 : i1 to i32
    %c0_i32_9 = arith.constant 0 : i32
    %11 = arith.cmpi ne, %10, %c0_i32_9 : i32
    scf.if %11 {
      %c0_10 = arith.constant 0 : index
      %c0_11 = arith.constant 0 : index
      %12 = vector.load %arg6[%c0_10, %c0_11] : memref<16x64xf32, #tpu.memory_space<vmem>>, vector<16x64xf32>
      %c0_12 = arith.constant 0 : index
      %c0_13 = arith.constant 0 : index
      %13 = vector.load %arg5[%c0_12, %c0_13] : memref<16x64xf32, #tpu.memory_space<vmem>>, vector<16x64xf32>
      tpu.vector_store %arg5[%c0_12, %c0_13], %12 {strides = array<i32>} : memref<16x64xf32, #tpu.memory_space<vmem>>, vector<16x64xf32>,
    } else {
    }
    return
  }
  func.func @transform_0(%arg0: i32, %arg1: i32, %arg2: i32) -> (i32, i32) {
    %c0_i32 = arith.constant 0 : i32
    return %arg0, %arg2 : i32, i32
  }
  func.func @transform_1(%arg0: i32, %arg1: i32, %arg2: i32) -> (i32, i32) {
    %c0_i32 = arith.constant 0 : i32
    return %arg2, %arg1 : i32, i32
  }
  func.func @transform_2(%arg0: i32, %arg1: i32, %arg2: i32) -> (i32, i32) {
    %c0_i32 = arith.constant 0 : i32
    return %arg0, %arg1 : i32, i32
  }
}

</mosaic_0001>

<bundles_post_ra>
// kernel: tpu_custom_call.1
= control target key start
LH: loop header
LB: loop body
LE: loop exit
PB: predicated region body
PF: predicated region fallthrough
CT: control target
= control target key end

     0   :  { %7 = vsyncpa [#allocation4], 0  ;;  %s305_s0 = inlined_call_operand.hbm [shape: f32[16,32], index: 0, kind: input, shape index: {}]   ;;  %s306_s1 = inlined_call_operand.hbm [shape: f32[32,64], index: 1, kind: input, shape index: {}]   ;;  %s307_s2 = inlined_call_operand.hbm [shape: f32[16,64], index: 2, kind: output, shape index: {}]  }
   0x1   :  { %8 = vsyncpa [#allocation7], 0 }
   0x2   :  { %9 = vsyncpa [#allocation5], 0  ;;  %s258_s9 = smov [#allocation3]  }
   0x3   :  { %s15_s10 = sshll.u32 %s258_s9, 4  ;;  %s16_s10 = int_to_ptr.vmem [resolvable:$true] %s15_s10 }
   0x4   :  { %s200_s11 = scalar_lea.vmem %s16_s10, 256  ;;  %p205_p1 = scmp.lt.s32.totalorder %s16_s10, %s16_s10 }
   0x5   :  { %p201_p0 = scmp.ne.s32.totalorder %s16_s10, %s200_s11  ;;  %p206_p2 = scmp.lt.s32.totalorder %s200_s11, %s200_s11 }
   0x7   :  { %p207_p3 = por %p206_p2, %p205_p1 }
   0x9   :  { %p208_p4 = pnand %p207_p3, %p201_p0 }
   0xb   :  { %211 = shalt.err (!%p208_p4)
}
   0xc   :  { %s259_s12 = smov 128   ;;  %s260_s13 = smov 8  }
   0xd   :  { %21 = dma.hbm_to_vmem [thread:$0]  %s305_s0, 256, %s16_s10, [#allocation4], %s259_s12, %s259_s12, %s260_s13  }
   0xe   :  { %s261_s16 = smov [#allocation6]  }
   0xf   :  { %s27_s17 = sshll.u32 %s261_s16, 4  ;;  %s28_s17 = int_to_ptr.vmem [resolvable:$true] %s27_s17 }
  0x10   :  { %s220_s18 = scalar_lea.vmem %s28_s17, 512  ;;  %p225_p6 = scmp.lt.s32.totalorder %s28_s17, %s28_s17 }
  0x11   :  { %p221_p5 = scmp.ne.s32.totalorder %s28_s17, %s220_s18  ;;  %p226_p7 = scmp.lt.s32.totalorder %s220_s18, %s220_s18 }
  0x13   :  { %p227_p8 = por %p226_p7, %p225_p6 }
  0x15   :  { %p228_p9 = pnand %p227_p8, %p221_p5 }
  0x17   :  { %231 = shalt.err (!%p228_p9)
}
  0x18   :  { %33 = dma.hbm_to_vmem [thread:$0]  %s306_s1, 512, %s28_s17, [#allocation7], %s259_s12, %s259_s12, %s260_s13  }
  0x19   :  { %252 = dma.done.wait [#allocation4], 256  }
  0x1a   :  { %253 = vsyncadd [#allocation4], 4294967040 }
  0x1b   :  { %254 = dma.done.wait [#allocation7], 512  }
  0x1c   :  { %255 = vsyncadd [#allocation7], 4294966784  ;;  %vm44_vm0 = vcmask 523264   ;;  %v262_v0 = vmov 0.0   ;;  %vm55_vm1 = vcmask 261120   ;;  %v54_v1 = vld [vmem:[#allocation6 + $0x18] sm:$0xff] }
  0x1d   :  { %46 = vst.msk [vmem:[#allocation2 + $0x8] sm:$0xff] %vm44_vm0, %v262_v0  ;;  %45 = vst.msk [vmem:[#allocation2] sm:$0xff] %vm44_vm0, %v262_v0  ;;  %v53_v2 = vld [vmem:[#allocation6 + $0x10] sm:$0xff]  ;;  %175 = vmatprep.subr.mxu0 %v54_v1  ;;  %v52_v4 = vld [vmem:[#allocation6 + $0x8] sm:$0xff]  ;;  %s263_s0 = smov [#allocation8]  }
  0x1e   :  { %v49_v3 = vld [vmem:[#allocation3] sm:$0xff]  ;;  %176 = vmatpush3.msra.mxu0 %v54_v1  ;;  %v51_v5 = vld [vmem:[#allocation6] sm:$0xff]  ;;  %v50_v6 = vld [vmem:[#allocation3 + $0x8] sm:$0xff]  ;;  %s154_s1 = sshll.u32 %s263_s0, 4  ;;  %s155_s1 = int_to_ptr.vmem [resolvable:$true] %s154_s1 }
  0x1f   :  { %183 = vmatprep.mubr.msk.f32.mxu0 %vm55_vm1, %v49_v3  ;;  %177 = vmatprep.subr.mxu0 %v53_v2  ;;  %s232_s21 = scalar_lea.vmem %s155_s1, 256  ;;  %p237_p11 = scmp.lt.s32.totalorder %s155_s1, %s155_s1 }
  0x20   :  { %178 = vmatpush3.msra.mxu0 %v53_v2  ;;  %p233_p10 = scmp.ne.s32.totalorder %s155_s1, %s232_s21  ;;  %p238_p12 = scmp.lt.s32.totalorder %s232_s21, %s232_s21 }
  0x21   :  { %179 = vmatprep.subr.mxu0 %v52_v4 }
  0x22   :  { %180 = vmatpush3.msra.mxu0 %v52_v4  ;;  %p239_p13 = por %p238_p12, %p237_p11 }
  0x23   :  { %181 = vmatprep.subr.mxu0 %v51_v5 }
  0x24   :  { %182 = vmatpush3.msra.mxu0 %v51_v5  ;;  %v48_v7 = vld [vmem:[#allocation2 + $0x8] sm:$0xff]  ;;  %v47_v9 = vld [vmem:[#allocation2] sm:$0xff]  ;;  %p240_p0 = pnand %p239_p13, %p233_p10 }
  0x25   :  { %184 = vmatmul.mubr.msk.f32.vlgmr.msra.gmra.mxu0 %vm55_vm1, %v50_v6 }
  0xe5   :  { %v185_v8 = vpop.f32.mrf.mxu0 }
  0xe6   :  { %v138_v10 = vadd.f32 %v185_v8, %v48_v7 }
  0xe7   :  { %v128_v11 = vpop.f32.mrf.mxu0 }
  0xe8   :  { %141 = vst.msk [vmem:[#allocation2 + $0x8] sm:$0xff] %vm44_vm0, %v138_v10  ;;  %v137_v12 = vadd.f32 %v128_v11, %v47_v9 }
  0xea   :  { %140 = vst.msk [vmem:[#allocation2] sm:$0xff] %vm44_vm0, %v137_v12 }
  0xef   :  { %v146_v13 = vld [vmem:[#allocation2 + $0x8] sm:$0xff] }
  0xf0   :  { %148 = vst.msk [vmem:[#allocation8 + $0x8] sm:$0xff] %vm44_vm0, %v146_v13 }
  0xf1   :  { %v145_v14 = vld [vmem:[#allocation2] sm:$0xff] }
  0xf2   :  { %147 = vst.msk [vmem:[#allocation8] sm:$0xff] %vm44_vm0, %v145_v14 }
  0xf3   :  { %243 = shalt.err (!%p240_p0)
}
  0xf4   :  { %160 = dma.vmem_to_hbm [thread:$0]  %s155_s1, 256, %s307_s2, [#allocation5], %s259_s12, %s259_s12, %s260_s13  }
  0xf5   :  { %256 = dma.done.wait [#allocation5], 256  }
  0xf6   :  { %257 = vsyncadd [#allocation5], 4294967040 }
  0xf7   :  { %164 = vsyncpa [#allocation4], 1 }
  0xf8   :  { %165 = vsyncpa [#allocation7], 1 }
  0xf9   :  { %166 = vsyncpa [#allocation5], 1 }

</bundles_post_ra>
